<compile_context>
chip_gen: v5e
topology: v5e:2x2
jax: 0.10.0
libtpu: 0.0.40
codegen_flags: <defaults>
</compile_context>

<pallas_src>
import jax
import jax.numpy as jnp
from jax import lax
from jax.experimental import pallas as pl
from jax.experimental.pallas import tpu as pltpu


def _round_up(x, m):
    return ((x + m - 1) // m) * m


def _pick_row_tile(H, W, max_elems=16384):
    """Largest divisor TH of H with TH*W a multiple of 128 and <= max_elems."""
    best = None
    for th in range(1, H + 1):
        if H % th == 0 and (th * W) % 128 == 0 and th * W <= max_elems:
            best = th
    return best if best is not None else H     # fallback: whole image per grid step


def _vmem_limit_bytes():
    """Per-generation scoped-VMEM limit (leave headroom below physical capacity)."""
    try:
        cap = int(pltpu.get_tpu_info().vmem_capacity_bytes)
    except Exception:
        cap = 64 * 1024 * 1024                 # conservative (v7x physical)
    return int(min(cap - 8 * 1024 * 1024, 100 * 1024 * 1024))


def overlap_patch_embed(x, weight, bias=None, *, compute_dtype=jnp.float32,
                        out_dtype=None, max_tile_elems=16384):
    """3x3 stride-1 pad-1 convolution (OverlapPatchEmbed.forward).

    x:      (B, C_in, H, W)  (PyTorch NCHW layout)
    weight: (C_out, C_in, 3, 3)  (PyTorch OIHW layout)
    bias:   (C_out,) or None
    returns (B, C_out, H, W), dtype = out_dtype or x.dtype
    """
    B, Cin, H, W = x.shape
    Cout, Cin_w, KH, KW = weight.shape
    assert Cin_w == Cin and KH == 3 and KW == 3
    out_dtype = x.dtype if out_dtype is None else out_dtype

    TH = _pick_row_tile(H, W, max_tile_elems)
    nH = H // TH
    L = TH * W                                  # spatial elements per tile
    K = Cin * KH * KW                           # 27

    # ---------- wrapper-side layout prep (cheap passes over the tiny input only) ----
    # flat[b, c, 1 + r*W + j] = value of the *vertically* zero-padded image at padded
    # row r in [0, H+2), column j (1 leading zero keeps the kw=-1 tap of pixel (0,0)
    # in range).  Halo window i (one per row tile) is flat[..., i*L : i*L + WIN].
    WIN = _round_up(L + 2 * W + 2, 128)
    tail = max(WIN - L - 2 * W - 1, 0)
    flat = x.reshape(B, Cin, H * W).astype(compute_dtype)
    flat = jnp.pad(flat, ((0, 0), (0, 0), (1 + W, W + tail)))
    idx = (jnp.arange(nH, dtype=jnp.int32)[:, None] * L
           + jnp.arange(WIN, dtype=jnp.int32)[None, :])             # (nH, WIN)
    win = jnp.transpose(flat[:, :, idx], (0, 2, 1, 3))              # (B, nH, Cin, WIN)

    # Weights: (Cout, Cin, 3, 3) -> (Cout, 27), k ordered (kh, kw, c) to match the
    # slab rows built in the kernel.
    w2 = jnp.transpose(weight, (0, 2, 3, 1)).reshape(Cout, K).astype(compute_dtype)

    # Horizontal-border masks: the flat windows wrap across rows at the image's
    # left/right edge; those lanes must contribute zero (like Conv2d zero padding).
    col = jnp.arange(L, dtype=jnp.int32) % W
    masks = jnp.stack([(col != 0), (col != W - 1)]).astype(compute_dtype)   # (2, L)

    has_bias = bias is not None
    if has_bias:
        b2 = bias.reshape(Cout, 1).astype(jnp.float32)

    def kernel(*refs):
        if has_bias:
            win_ref, m_ref, w_ref, b_ref, o_ref, slab_ref = refs
        else:
            win_ref, m_ref, w_ref, o_ref, slab_ref = refs
        # Assemble the (27, L) im2col slab: 9 taps x Cin contiguous lane slices of the
        # halo window, all at static offsets; mask the horizontal-wrap lanes.
        for kh in range(KH):
            for kw in range(KW):
                rows = win_ref[0, 0, :, pl.ds(kh * W + kw, L)]       # (Cin, L)
                if kw == 0:
                    rows = rows * m_ref[0:1, :]
                elif kw == KW - 1:
                    rows = rows * m_ref[1:2, :]
                r0 = (kh * KW + kw) * Cin
                slab_ref[r0:r0 + Cin, :] = rows
        # Single fused K=27 MXU matmul, f32 accumulation; the result is already in the
        # NCHW-compatible (Cout, TH*W) layout -> lane-dense store, no transpose.
        res = jnp.dot(w_ref[...], slab_ref[...],
                      preferred_element_type=jnp.float32)            # (Cout, L)
        if has_bias:
            res = res + b_ref[...]
        o_ref[0] = res.astype(o_ref.dtype)

    in_specs = [
        pl.BlockSpec((1, 1, Cin, WIN), lambda b, i: (b, i, 0, 0)),   # halo row window
        pl.BlockSpec((2, L), lambda b, i: (0, 0)),                   # border masks
        pl.BlockSpec((Cout, K), lambda b, i: (0, 0)),                # (48, 27) weights
    ]
    inputs = [win, masks, w2]
    if has_bias:
        in_specs.append(pl.BlockSpec((Cout, 1), lambda b, i: (0, 0)))
        inputs.append(b2)

    out_flat = pl.pallas_call(
        kernel,
        out_shape=jax.ShapeDtypeStruct((B, Cout, H * W), out_dtype),
        grid_spec=pltpu.PrefetchScalarGridSpec(
            num_scalar_prefetch=0,
            grid=(B, nH),
            in_specs=in_specs,
            out_specs=pl.BlockSpec((1, Cout, L), lambda b, i: (b, 0, i)),
            scratch_shapes=[pltpu.VMEM((K, L), compute_dtype)],      # im2col slab
        ),
        compiler_params=pltpu.CompilerParams(
            dimension_semantics=("parallel", "parallel"),
            vmem_limit_bytes=_vmem_limit_bytes()),
    )(*inputs)

    # (B, Cout, H*W) -> (B, Cout, H, W): adjacent-dim split, no data movement.
    return out_flat.reshape(B, Cout, H, W)


def _reference(x, weight, bias=None):
    """Exact f32 reference of the PyTorch forward (cross-correlation conv, pad=1)."""
    out = lax.conv_general_dilated(
        x.astype(jnp.float32), weight.astype(jnp.float32),
        window_strides=(1, 1), padding=((1, 1), (1, 1)),
        dimension_numbers=("NCHW", "OIHW", "NCHW"),
        precision=lax.Precision.HIGHEST)
    if bias is not None:
        out = out + bias[None, :, None, None]
    return out.astype(x.dtype)


if __name__ == "__main__":
    # Module defaults: in_c=3, embed_dim=48, bias=False.  Small spatial size for demo.
    B, Cin, H, W = 2, 3, 16, 16
    embed_dim = 48

    key = jax.random.PRNGKey(0)
    kx, kw = jax.random.split(key)

    # Inputs are rounded to bf16-representable values so the comparison against the
    # exact-f32 reference stays tight no matter how many MXU passes the compiler uses
    # for the f32 matmul (only f32 summation-order differences remain).  For arbitrary
    # f32 inputs expect ~1e-3 relative deviation if the backend uses a 1-pass matmul.
    x = jax.random.normal(kx, (B, Cin, H, W), jnp.float32)
    x = x.astype(jnp.bfloat16).astype(jnp.float32)
    w = 0.1 * jax.random.normal(kw, (embed_dim, Cin, 3, 3), jnp.float32)
    w = w.astype(jnp.bfloat16).astype(jnp.float32)

    out = overlap_patch_embed(x, w, bias=None)      # bias=False, as in the module default
    out = jax.block_until_ready(out)

    ref = _reference(x, w, bias=None)

    assert out.shape == (B, embed_dim, H, W)
    assert out.dtype == x.dtype
    err = float(jnp.max(jnp.abs(out.astype(jnp.float32) - ref.astype(jnp.float32))))
    assert err < 1e-4, f"mismatch vs reference, max err = {err}"

    print("KERNEL_OK")
</pallas_src>

<mosaic_0001>
module attributes {stable_mosaic.version = 11 : i64} {
  func.func @kernel(%arg0: i32, %arg1: i32, %arg2: memref<1x1x3x384xf32, #tpu.memory_space<vmem>>, %arg3: memref<2x256xf32, #tpu.memory_space<vmem>>, %arg4: memref<48x27xf32, #tpu.memory_space<vmem>>, %arg5: memref<1x48x256xf32, #tpu.memory_space<vmem>>, %arg6: memref<27x256xf32, #tpu.memory_space<vmem>>) attributes {dimension_semantics = [#tpu.dimension_semantics<parallel>, #tpu.dimension_semantics<parallel>], iteration_bounds = array<i64: 2, 1>, scalar_prefetch = 0 : i64, scratch_operands = 1 : i64, tpu.core_type = #tpu.core_type<tc>, window_params = [{transform_indices = @transform_0, window_bounds = array<i64: 1, 1, 3, 384>}, {pipeline_mode = #tpu.pipeline_mode<synchronous>, transform_indices = @transform_1, window_bounds = array<i64: 2, 256>}, {pipeline_mode = #tpu.pipeline_mode<synchronous>, transform_indices = @transform_2, window_bounds = array<i64: 48, 27>}, {transform_indices = @transform_3, window_bounds = array<i64: 1, 48, 256>}]} {
    %c0 = arith.constant 0 : index
    %c0_0 = arith.constant 0 : index
    %c0_1 = arith.constant 0 : index
    %c0_2 = arith.constant 0 : index
    %0 = vector.load %arg2[%c0, %c0_0, %c0_1, %c0_2] : memref<1x1x3x384xf32, #tpu.memory_space<vmem>>, vector<1x1x3x256xf32>
    %1 = vector.shape_cast %0 : vector<1x1x3x256xf32> to vector<3x256xf32>
    %c0_3 = arith.constant 0 : index
    %c0_4 = arith.constant 0 : index
    %2 = vector.load %arg3[%c0_3, %c0_4] : memref<2x256xf32, #tpu.memory_space<vmem>>, vector<1x256xf32>
    %3 = vector.broadcast %2 : vector<1x256xf32> to vector<3x256xf32>
    %4 = arith.mulf %1, %3 : vector<3x256xf32>
    %c0_5 = arith.constant 0 : index
    %c0_6 = arith.constant 0 : index
    %5 = vector.load %arg6[%c0_5, %c0_6] : memref<27x256xf32, #tpu.memory_space<vmem>>, vector<3x256xf32>
    tpu.vector_store %arg6[%c0_5, %c0_6], %4 {strides = array<i32>} : memref<27x256xf32, #tpu.memory_space<vmem>>, vector<3x256xf32>,
    %c0_7 = arith.constant 0 : index
    %c0_8 = arith.constant 0 : index
    %c0_9 = arith.constant 0 : index
    %c1 = arith.constant 1 : index
    %6 = vector.load %arg2[%c0_7, %c0_8, %c0_9, %c1] : memref<1x1x3x384xf32, #tpu.memory_space<vmem>>, vector<1x1x3x256xf32>
    %7 = vector.shape_cast %6 : vector<1x1x3x256xf32> to vector<3x256xf32>
    %c3 = arith.constant 3 : index
    %c0_10 = arith.constant 0 : index
    %8 = vector.load %arg6[%c3, %c0_10] : memref<27x256xf32, #tpu.memory_space<vmem>>, vector<3x256xf32>
    tpu.vector_store %arg6[%c3, %c0_10], %7 {strides = array<i32>} : memref<27x256xf32, #tpu.memory_space<vmem>>, vector<3x256xf32>,
    %c0_11 = arith.constant 0 : index
    %c0_12 = arith.constant 0 : index
    %c0_13 = arith.constant 0 : index
    %c2 = arith.constant 2 : index
    %9 = vector.load %arg2[%c0_11, %c0_12, %c0_13, %c2] : memref<1x1x3x384xf32, #tpu.memory_space<vmem>>, vector<1x1x3x256xf32>
    %10 = vector.shape_cast %9 : vector<1x1x3x256xf32> to vector<3x256xf32>
    %c1_14 = arith.constant 1 : index
    %c0_15 = arith.constant 0 : index
    %11 = vector.load %arg3[%c1_14, %c0_15] : memref<2x256xf32, #tpu.memory_space<vmem>>, vector<1x256xf32>
    %12 = vector.broadcast %11 : vector<1x256xf32> to vector<3x256xf32>
    %13 = arith.mulf %10, %12 : vector<3x256xf32>
    %c6 = arith.constant 6 : index
    %c0_16 = arith.constant 0 : index
    %14 = vector.load %arg6[%c6, %c0_16] : memref<27x256xf32, #tpu.memory_space<vmem>>, vector<3x256xf32>
    tpu.vector_store %arg6[%c6, %c0_16], %13 {strides = array<i32>} : memref<27x256xf32, #tpu.memory_space<vmem>>, vector<3x256xf32>,
    %c0_17 = arith.constant 0 : index
    %c0_18 = arith.constant 0 : index
    %c0_19 = arith.constant 0 : index
    %c16 = arith.constant 16 : index
    %15 = vector.load %arg2[%c0_17, %c0_18, %c0_19, %c16] : memref<1x1x3x384xf32, #tpu.memory_space<vmem>>, vector<1x1x3x256xf32>
    %16 = vector.shape_cast %15 : vector<1x1x3x256xf32> to vector<3x256xf32>
    %c0_20 = arith.constant 0 : index
    %c0_21 = arith.constant 0 : index
    %17 = vector.load %arg3[%c0_20, %c0_21] : memref<2x256xf32, #tpu.memory_space<vmem>>, vector<1x256xf32>
    %18 = vector.broadcast %17 : vector<1x256xf32> to vector<3x256xf32>
    %19 = arith.mulf %16, %18 : vector<3x256xf32>
    %c9 = arith.constant 9 : index
    %c0_22 = arith.constant 0 : index
    %20 = vector.load %arg6[%c9, %c0_22] : memref<27x256xf32, #tpu.memory_space<vmem>>, vector<3x256xf32>
    tpu.vector_store %arg6[%c9, %c0_22], %19 {strides = array<i32>} : memref<27x256xf32, #tpu.memory_space<vmem>>, vector<3x256xf32>,
    %c0_23 = arith.constant 0 : index
    %c0_24 = arith.constant 0 : index
    %c0_25 = arith.constant 0 : index
    %c17 = arith.constant 17 : index
    %21 = vector.load %arg2[%c0_23, %c0_24, %c0_25, %c17] : memref<1x1x3x384xf32, #tpu.memory_space<vmem>>, vector<1x1x3x256xf32>
    %22 = vector.shape_cast %21 : vector<1x1x3x256xf32> to vector<3x256xf32>
    %c12 = arith.constant 12 : index
    %c0_26 = arith.constant 0 : index
    %23 = vector.load %arg6[%c12, %c0_26] : memref<27x256xf32, #tpu.memory_space<vmem>>, vector<3x256xf32>
    tpu.vector_store %arg6[%c12, %c0_26], %22 {strides = array<i32>} : memref<27x256xf32, #tpu.memory_space<vmem>>, vector<3x256xf32>,
    %c0_27 = arith.constant 0 : index
    %c0_28 = arith.constant 0 : index
    %c0_29 = arith.constant 0 : index
    %c18 = arith.constant 18 : index
    %24 = vector.load %arg2[%c0_27, %c0_28, %c0_29, %c18] : memref<1x1x3x384xf32, #tpu.memory_space<vmem>>, vector<1x1x3x256xf32>
    %25 = vector.shape_cast %24 : vector<1x1x3x256xf32> to vector<3x256xf32>
    %c1_30 = arith.constant 1 : index
    %c0_31 = arith.constant 0 : index
    %26 = vector.load %arg3[%c1_30, %c0_31] : memref<2x256xf32, #tpu.memory_space<vmem>>, vector<1x256xf32>
    %27 = vector.broadcast %26 : vector<1x256xf32> to vector<3x256xf32>
    %28 = arith.mulf %25, %27 : vector<3x256xf32>
    %c15 = arith.constant 15 : index
    %c0_32 = arith.constant 0 : index
    %29 = vector.load %arg6[%c15, %c0_32] : memref<27x256xf32, #tpu.memory_space<vmem>>, vector<3x256xf32>
    tpu.vector_store %arg6[%c15, %c0_32], %28 {strides = array<i32>} : memref<27x256xf32, #tpu.memory_space<vmem>>, vector<3x256xf32>,
    %c0_33 = arith.constant 0 : index
    %c0_34 = arith.constant 0 : index
    %c0_35 = arith.constant 0 : index
    %c32 = arith.constant 32 : index
    %30 = vector.load %arg2[%c0_33, %c0_34, %c0_35, %c32] : memref<1x1x3x384xf32, #tpu.memory_space<vmem>>, vector<1x1x3x256xf32>
    %31 = vector.shape_cast %30 : vector<1x1x3x256xf32> to vector<3x256xf32>
    %c0_36 = arith.constant 0 : index
    %c0_37 = arith.constant 0 : index
    %32 = vector.load %arg3[%c0_36, %c0_37] : memref<2x256xf32, #tpu.memory_space<vmem>>, vector<1x256xf32>
    %33 = vector.broadcast %32 : vector<1x256xf32> to vector<3x256xf32>
    %34 = arith.mulf %31, %33 : vector<3x256xf32>
    %c18_38 = arith.constant 18 : index
    %c0_39 = arith.constant 0 : index
    %35 = vector.load %arg6[%c18_38, %c0_39] : memref<27x256xf32, #tpu.memory_space<vmem>>, vector<3x256xf32>
    tpu.vector_store %arg6[%c18_38, %c0_39], %34 {strides = array<i32>} : memref<27x256xf32, #tpu.memory_space<vmem>>, vector<3x256xf32>,
    %c0_40 = arith.constant 0 : index
    %c0_41 = arith.constant 0 : index
    %c0_42 = arith.constant 0 : index
    %c33 = arith.constant 33 : index
    %36 = vector.load %arg2[%c0_40, %c0_41, %c0_42, %c33] : memref<1x1x3x384xf32, #tpu.memory_space<vmem>>, vector<1x1x3x256xf32>
    %37 = vector.shape_cast %36 : vector<1x1x3x256xf32> to vector<3x256xf32>
    %c21 = arith.constant 21 : index
    %c0_43 = arith.constant 0 : index
    %38 = vector.load %arg6[%c21, %c0_43] : memref<27x256xf32, #tpu.memory_space<vmem>>, vector<3x256xf32>
    tpu.vector_store %arg6[%c21, %c0_43], %37 {strides = array<i32>} : memref<27x256xf32, #tpu.memory_space<vmem>>, vector<3x256xf32>,
    %c0_44 = arith.constant 0 : index
    %c0_45 = arith.constant 0 : index
    %c0_46 = arith.constant 0 : index
    %c34 = arith.constant 34 : index
    %39 = vector.load %arg2[%c0_44, %c0_45, %c0_46, %c34] : memref<1x1x3x384xf32, #tpu.memory_space<vmem>>, vector<1x1x3x256xf32>
    %40 = vector.shape_cast %39 : vector<1x1x3x256xf32> to vector<3x256xf32>
    %c1_47 = arith.constant 1 : index
    %c0_48 = arith.constant 0 : index
    %41 = vector.load %arg3[%c1_47, %c0_48] : memref<2x256xf32, #tpu.memory_space<vmem>>, vector<1x256xf32>
    %42 = vector.broadcast %41 : vector<1x256xf32> to vector<3x256xf32>
    %43 = arith.mulf %40, %42 : vector<3x256xf32>
    %c24 = arith.constant 24 : index
    %c0_49 = arith.constant 0 : index
    %44 = vector.load %arg6[%c24, %c0_49] : memref<27x256xf32, #tpu.memory_space<vmem>>, vector<3x256xf32>
    tpu.vector_store %arg6[%c24, %c0_49], %43 {strides = array<i32>} : memref<27x256xf32, #tpu.memory_space<vmem>>, vector<3x256xf32>,
    %c0_50 = arith.constant 0 : index
    %c0_51 = arith.constant 0 : index
    %45 = vector.load %arg4[%c0_50, %c0_51] : memref<48x27xf32, #tpu.memory_space<vmem>>, vector<48x27xf32>
    %c0_52 = arith.constant 0 : index
    %c0_53 = arith.constant 0 : index
    %46 = vector.load %arg6[%c0_52, %c0_53] : memref<27x256xf32, #tpu.memory_space<vmem>>, vector<27x256xf32>
    %cst = arith.constant dense<0.000000e+00> : vector<48x256xf32>
    %47 = tpu.matmul %45, %46, %cst {dimension_numbers = #tpu.dot_dimension_numbers<[1], [0], [0], [1], [0, 0, 1, 1], [], []>} : vector<48x27xf32>, vector<27x256xf32>, vector<48x256xf32> -> vector<48x256xf32>
    %c0_54 = arith.constant 0 : index
    %c0_55 = arith.constant 0 : index
    %c0_56 = arith.constant 0 : index
    %48 = vector.load %arg5[%c0_54, %c0_55, %c0_56] : memref<1x48x256xf32, #tpu.memory_space<vmem>>, vector<1x48x256xf32>
    %49 = vector.shape_cast %48 : vector<1x48x256xf32> to vector<48x256xf32>
    %50 = vector.shape_cast %47 : vector<48x256xf32> to vector<1x48x256xf32>
    tpu.vector_store %arg5[%c0_54, %c0_55, %c0_56], %50 {strides = array<i32>} : memref<1x48x256xf32, #tpu.memory_space<vmem>>, vector<1x48x256xf32>,
    return
  }
  func.func @transform_0(%arg0: i32, %arg1: i32) -> (i32, i32, i32, i32) {
    %c0_i32 = arith.constant 0 : i32
    %c0_i32_0 = arith.constant 0 : i32
    %c0_i32_1 = arith.constant 0 : i32
    return %arg0, %arg1, %c0_i32, %c0_i32_0 : i32, i32, i32, i32
  }
  func.func @transform_1(%arg0: i32, %arg1: i32) -> (i32, i32) {
    %c0_i32 = arith.constant 0 : i32
    %c0_i32_0 = arith.constant 0 : i32
    %c0_i32_1 = arith.constant 0 : i32
    return %c0_i32, %c0_i32_0 : i32, i32
  }
  func.func @transform_2(%arg0: i32, %arg1: i32) -> (i32, i32) {
    %c0_i32 = arith.constant 0 : i32
    %c0_i32_0 = arith.constant 0 : i32
    %c0_i32_1 = arith.constant 0 : i32
    return %c0_i32, %c0_i32_0 : i32, i32
  }
  func.func @transform_3(%arg0: i32, %arg1: i32) -> (i32, i32, i32) {
    %c0_i32 = arith.constant 0 : i32
    %c0_i32_0 = arith.constant 0 : i32
    return %arg0, %c0_i32, %arg1 : i32, i32, i32
  }
}

</mosaic_0001>

<bundles_post_ra>
// kernel: tpu_custom_call.1
= control target key start
LH: loop header
LB: loop body
LE: loop exit
PB: predicated region body
PF: predicated region fallthrough
CT: control target
= control target key end

     0   :  { %8 = vsyncpa [#allocation4], 0  ;;  %s1126_s0 = inlined_call_operand.vmem [shape: f32[2,1,3,384], index: 0, kind: input, shape index: {}]   ;;  %s1127_s1 = inlined_call_operand.vmem [shape: f32[2,256], index: 1, kind: input, shape index: {}]   ;;  %s1128_s2 = inlined_call_operand.vmem [shape: f32[48,27], index: 2, kind: input, shape index: {}]   ;;  %s1129_s3 = inlined_call_operand.hbm [shape: f32[2,48,256], index: 3, kind: output, shape index: {}]  }
   0x1   :  { %10 = vsyncpa [#allocation4 + $0x1], 0  ;;  %s941_s12 = smov 0   ;;  %s943_s13 = smov 0  }
   0x2   :  { %s945_s14 = smov 0   ;;  %s947_s15 = smov 0  }
   0x3   :  { %s949_s16 = smov 0   ;;  %s951_s17 = smov 0  }
   0x4 LB: > { %s721_s18 = sadd.s32 4294967295, %s905_s17   ;;  %s722_s19 = sadd.s32 4294967294, %s905_s17   ;;  %s905_s17 = sphi %s951_s17, %s16_s17   ;;  %s901_s16 = sphi %s949_s16, %s1136_s16   ;;  %s897_s15 = sphi %s947_s15, %s1135_s15   ;;  %s893_s14 = sphi %s945_s14, %s1134_s14   ;;  %s889_s13 = sphi %s943_s13, %s1133_s13   ;;  %s885_s12 = sphi %s941_s12, %s1132_s12  }
   0x5   : > { %s28_s20 = sadd.s32 1, %s901_s16  ;;  %s107_s21 = sadd.s32 1, %s893_s14 }
   0x6   : > { %p30_p0 = scmp.ge.s32.totalorder %s28_s20, 2  ;;  %p117_p1 = scmp.ne.s32.totalorder %s893_s14, %s889_s13 }
   0x7   : > { %p118_p2 = scmp.eq.s32.totalorder %s721_s18, 1  ;;  %p123_p3 = scmp.ne.s32.totalorder %s889_s13, %s885_s12 }
   0x8   : > { %s1138_s20 = smov (%p30_p0, %s28_s20), 0  ;;  %p124_p5 = scmp.eq.s32.totalorder %s722_s19, 1 }
   0x9   : > { %p981_p4 = por %p118_p2, %p117_p1  ;;  %s102_s23 = ssub.s32 %s901_s16, %s1138_s20 }
   0xa   : > { %p725_p6 = scmp.ge.s32.totalorder %s905_s17, 1  ;;  %p105_p7 = scmp.eq.s32.totalorder %s102_s23, 0 }
   0xb   : > { %p988_p8 = por %p124_p5, %p123_p3  ;;  %p160_p9 = scmp.lt.s32.totalorder %s905_s17, 3 }
   0xc   : > { %s994_s25 = scalar_select %p105_p7, %s893_s14, %s107_s21  }
   0xd   : > { %p161_p10 = pnand %p725_p6, %p160_p9 }
   0xe   : > { %p188_p11 = scmp.lt.s32.totalorder (!%p161_p10), %s897_s15, 1  ;;  %s907_s11 = smov (!%p161_p10), 2  }
   0xf   : > { %164 = sbr.rel (%p161_p10) target bundleno = 492 (0x1ec), region = 32  ;;  %s908_s27 = smov (!%p161_p10), 18  }
  0x10   : > { %s909_s28 = smov (!%p161_p10), 34   ;;  %s910_s29 = smov (!%p161_p10), 16  }
  0x11   : > { %s912_s4 = smov (!%p161_p10), 126   ;;  %s913_s5 = smov (!%p161_p10), 112  }
  0x12   : > { %s914_s6 = smov (!%p161_p10), 111   ;;  %s915_s7 = smov (!%p161_p10), 110  }
  0x13   : > { %s917_s9 = smov (!%p161_p10), 95   ;;  %s918_s10 = smov (!%p161_p10), 94  }
  0x14   : > { %v727_v0 = vld [vmem:[%s1127_s1 + $0x1] ss:$2 sm:$0x3]  ;;  %vm204_vm0 = vcmask 1043456   ;;  %s189_s30 = scalar_select %p188_p11, %s897_s15, 1  ;;  %vm254_vm1 = vcmask 15360  }
  0x15   : > { %v247_v1 = vperm.slane %v727_v0, 0  ;;  %v248_v2 = vperm.slane %v727_v0, 1  ;;  %v199_v3 = vld [vmem:[%s1127_s1] ss:$2 sm:$0x3]  ;;  %vm297_vm2 = vcmask 130048  }
  0x16   : > { %v201_v4 = vperm.slane %v199_v3, 0  ;;  %v202_v5 = vperm.slane %v199_v3, 1  ;;  %v288_v6 = vld [vmem:[%s1127_s1] ss:$2 sm:$0x3]  ;;  %s756_s8 = smul.u32 12, %s189_s30 }
  0x17   : > { %v249_v7 = vrot.slane %v248_v2, 4  ;;  %v291_v8 = vperm.slane %v288_v6, 1  ;;  %v728_v9 = vld [vmem:[%s1127_s1 + $0x1] ss:$2 sm:$0x3]  ;;  %v290_v20 = vperm.slane %v288_v6, 0 }
  0x18   : > { %v203_v10 = vrot.slane %v202_v5, 4  ;;  %v355_v11 = vperm.slane %v728_v9, 0  ;;  %v356_v12 = vperm.slane %v728_v9, 1  ;;  %v396_v14 = vld [vmem:[%s1127_s1] ss:$2 sm:$0x3]  ;;  %s1017_s21 = scalar_lea.vmem %s1126_s0, %s756_s8 }
  0x19   : > { %v250_v13 = vsel %vm204_vm0, %v247_v1, %v249_v7  ;;  %v399_v17 = vperm.slane %v396_v14, 1  ;;  %v729_v18 = vld [vmem:[%s1127_s1 + $0x1] ss:$2 sm:$0x3]  ;;  %v292_v21 = vrot.slane %v291_v8, 4  ;;  %v398_v27 = vperm.slane %v396_v14, 0 }
  0x1a   : > { %251 = vrot.lane.b32.xlu0 %v250_v13, %s907_s11  ;;  %v205_v15 = vsel %vm204_vm0, %v201_v4, %v203_v10  ;;  %v357_v16 = vrot.slane %v356_v12, 4  ;;  %v198_v19 = vld [vmem:[%s1017_s21] sm:$0x77]  ;;  %v465_v22 = vperm.slane %v729_v18, 0  ;;  %v466_v23 = vperm.slane %v729_v18, 1  ;;  %s911_s30 = smov 32  }
  0x1b   : > { %v207_v24 = vmul.f32 %v205_v15, %v198_v19  ;;  %v400_v28 = vrot.slane %v399_v17, 4  ;;  %v293_v29 = vsel %vm204_vm0, %v290_v20, %v292_v21  ;;  %v216_v32 = vld [vmem:[%s1017_s21] sm:$0x77]  ;;  %v217_v35 = vld [vmem:[%s1017_s21 + $0x8] sm:$0x7]  ;;  %vm362_vm3 = vcmask 146432  }
  0x1c   : > { %v358_v25 = vsel %vm204_vm0, %v355_v11, %v357_v16  ;;  %v467_v26 = vrot.slane %v466_v23, 4  ;;  %222 = vst [vmem:[#allocation1 + $0x10] ss:$2 sm:$0xff] %v217_v35  ;;  %v243_v37 = vld [vmem:[%s1017_s21 + $0x8] sm:$0x7]  ;;  %vm405_vm4 = vcmask 261120  }
  0x1d   : > { %359 = vrot.lane.b32.xlu1 %v358_v25, %s908_s27  ;;  %209 = vst [vmem:[#allocation1] ss:$2 sm:$0xff] %v207_v24  ;;  %v401_v31 = vsel %vm204_vm0, %v398_v27, %v400_v28  ;;  %v242_v38 = vld [vmem:[%s1017_s21] sm:$0x77]  ;;  %v287_v47 = vld [vmem:[%s1017_s21 + $0x8] sm:$0x7] }
  0x1e   : > { %v468_v30 = vsel %vm204_vm0, %v465_v22, %v467_v26  ;;  %v286_v48 = vld [vmem:[%s1017_s21] sm:$0x77]  ;;  %v328_v60 = vld [vmem:[%s1017_s21 + $0x8] sm:$0x7]  ;;  %vm472_vm5 = vcmask 277504   ;;  %s916_s8 = smov 96  }
  0x1f   : > { %469 = vrot.lane.b32.xlu2 %v468_v30, %s909_s28  ;;  %v327_v62 = vld [vmem:[%s1017_s21] sm:$0x77]  ;;  %v352_v63 = vld [vmem:[%s1017_s21 + $0x8] sm:$0x7]  ;;  %s919_s11 = smov 127   ;;  %vm277_vm6 = vcmask 1031168  }
  0x20   : > { %v351_v7 = vld [vmem:[%s1017_s21] sm:$0x77]  ;;  %v395_v12 = vld [vmem:[%s1017_s21 + $0x8] sm:$0x7]  ;;  %vm320_vm7 = vcmask 916480   ;;  %vm344_vm8 = vcmask 908288  }
  0x21   : > { %v394_v17 = vld [vmem:[%s1017_s21] sm:$0x77]  ;;  %v436_v27 = vld [vmem:[%s1017_s21 + $0x8] sm:$0x7]  ;;  %vm385_vm9 = vcmask 900096   ;;  %vm428_vm10 = vcmask 785408  }
  0x22   : > { %294 = vrot.lane.b32.xlu0 %v293_v29, %s910_s29  ;;  %v435_v30 = vld [vmem:[%s1017_s21] sm:$0x77]  ;;  %vm454_vm11 = vcmask 777216   ;;  %vm492_vm12 = vcmask 769024   ;;  %vm235_vm13 = vcmask 1039360   ;;  %vm532_vm14 = vcmask 1042432  }
  0x23   : > { %v1033_v40 = vld.sshfl [vmem:[#allocation1 + $0x10] sm:$0xff pattern:$0x75316420]  ;;  %vm513_vm15 = vcmask 220160  }
  0x24   : > { %v210_v33 = vld.sshfl [vmem:[#allocation1] sm:$0xff pattern:$0x75316420]  ;;  %v211_v34 = vld.sshfl [vmem:[#allocation1 + $0x8] sm:$0xff pattern:$0x75316420] }
  0x25   : > { %402 = vrot.lane.b32.xlu1 %v401_v31, %s911_s30  ;;  %220 = vst [vmem:[#allocation1] ss:$2 sm:$0xff] %v216_v32  ;;  %v462_v32 = vld [vmem:[%s1017_s21 + $0x8] sm:$0x7] }
  0x26   : > { %214 = vst [vmem:[#allocation2 + $0x30] sm:$0x7] %v210_v33 }
  0x27   : > { %215 = vst [vmem:[#allocation2] sm:$0x7] %v211_v34 }
  0x2c   : > { %v1035_v41 = vld.sshfl [vmem:[#allocation1] sm:$0xff pattern:$0x75316420]  ;;  %v1037_v42 = vld.sshfl [vmem:[#allocation1 + $0x8] sm:$0xff pattern:$0x75316420] }
  0x79   : > { %v470_v26 = vpop.permute.xlu2 %469 }
  0x7a   : > { %v471_v29 = vrot.slane %v470_v26, 4 }
  0x8c   : > { %v252_v36 = vpop.permute.xlu0 %251 }
  0x8d   : > { %v253_v39 = vrot.slane %v252_v36, 4 }
  0x8f   : > { %v255_v43 = vsel %vm254_vm1, %v253_v39, %v252_v36  ;;  %v259_v44 = vmul.f32 %v253_v39, %v243_v37  ;;  %v360_v59 = vpop.permute.xlu1 %359  ;;  %v461_v37 = vld [vmem:[%s1017_s21] sm:$0x77]  ;;  %v477_v39 = vmul.f32 %v471_v29, %v462_v32 }
  0x90   : > { %v258_v45 = vmul.f32 %v255_v43, %v242_v38  ;;  %v361_v0 = vrot.slane %v360_v59, 4  ;;  %v473_v38 = vsel %vm472_vm5, %v471_v29, %v470_v26 }
  0x91   : > { %264 = vst [vmem:[#allocation1 + $0x10] ss:$2 sm:$0xff] %v259_v44  ;;  %v476_v43 = vmul.f32 %v473_v38, %v461_v37  ;;  %v499_v38 = vld [vmem:[%s1128_s2] sm:$0xff] }
  0x92   : > { %262 = vst [vmem:[#allocation1] ss:$2 sm:$0xff] %v258_v45  ;;  %v367_v6 = vmul.f32 %v361_v0, %v352_v63  ;;  %v363_v8 = vsel %vm362_vm3, %v361_v0, %v360_v59 }
  0x93   : > { %v366_v11 = vmul.f32 %v363_v8, %v351_v7 }
  0x94   : > { %v295_v46 = vpop.permute.xlu0 %294 }
  0x95   : > { %v296_v49 = vrot.slane %v295_v46, 4 }
  0x97   : > { %v298_v50 = vsel %vm297_vm2, %v296_v49, %v295_v46  ;;  %v302_v51 = vmul.f32 %v296_v49, %v287_v47  ;;  %v403_v9 = vpop.permute.xlu1 %402 }
  0x98   : > { %v267_v52 = vld.sshfl [vmem:[#allocation1 + $0x10] sm:$0xff pattern:$0x75316420]  ;;  %v301_v53 = vmul.f32 %v298_v50, %v286_v48  ;;  %v404_v13 = vrot.slane %v403_v9, 4 }
  0x99   : > { %307 = vst [vmem:[#allocation1 + $0x10] ss:$2 sm:$0xff] %v302_v51  ;;  %v270_v54 = vrot.slane %v267_v52, 2  ;;  %v266_v55 = vld.sshfl [vmem:[#allocation1 + $0x8] sm:$0xff pattern:$0x75316420] }
  0x9a   : > { %v269_v56 = vrot.slane %v266_v55, 2  ;;  %v265_v57 = vld.sshfl [vmem:[#allocation1] sm:$0xff pattern:$0x75316420]  ;;  %v410_v16 = vmul.f32 %v404_v13, %v395_v12  ;;  %v406_v18 = vsel %vm405_vm4, %v404_v13, %v403_v9  ;;  %v226_v55 = vrot.slane %v1035_v41, 5 }
  0x9b   : > { %275 = vrot.lane.b32.xlu1 %v270_v54, %s912_s4  ;;  %v268_v58 = vrot.slane %v265_v57, 2  ;;  %305 = vst [vmem:[#allocation1] ss:$2 sm:$0xff] %v301_v53  ;;  %v409_v20 = vmul.f32 %v406_v18, %v394_v17  ;;  %v228_v53 = vrot.slane %v1033_v40, 5  ;;  %v227_v54 = vrot.slane %v1037_v42, 5 }
  0x9c   : > { %273 = vrot.lane.b32.xlu0 %v269_v56, %s912_s4 }
  0x9d   : > { %271 = vrot.lane.b32.xlu2 %v268_v58, %s912_s4 }
  0xa0   : > { %v310_v61 = vld.sshfl [vmem:[#allocation1 + $0x10] sm:$0xff pattern:$0x75316420] }
  0xa1   : > { %v313_v1 = vrot.slane %v310_v61, 7  ;;  %334 = vst [vmem:[#allocation1 + $0x11] ss:$2 sm:$0xff] %v328_v60 }
  0xa2   : > { %v309_v2 = vld.sshfl [vmem:[#allocation1 + $0x8] sm:$0xff pattern:$0x75316420]  ;;  %v308_v3 = vld.sshfl [vmem:[#allocation1] sm:$0xff pattern:$0x75316420] }
  0xa3   : > { %318 = vrot.lane.b32.xlu1 %v313_v1, %s913_s5  ;;  %v312_v4 = vrot.slane %v309_v2, 7  ;;  %v311_v5 = vrot.slane %v308_v3, 7  ;;  %332 = vst [vmem:[#allocation1 + $0x1] ss:$2 sm:$0xff] %v327_v62 }
  0xa5   : > { %316 = vrot.lane.b32.xlu0 %v312_v4, %s913_s5  ;;  %314 = vrot.lane.b32.xlu2 %v311_v5, %s913_s5  ;;  %s847_s5 = scalar_lea.hbm %s1129_s3, 192 }
  0xa8   : > { %v337_v10 = vld.sshfl [vmem:[#allocation1 + $0x10] sm:$0xff pattern:$0x75316420] }
  0xa9   : > { %372 = vst [vmem:[#allocation1 + $0x10] ss:$2 sm:$0xff] %v367_v6 }
  0xaa   : > { %v336_v14 = vld.sshfl [vmem:[#allocation1 + $0x8] sm:$0xff pattern:$0x75316420]  ;;  %v335_v15 = vld.sshfl [vmem:[#allocation1] sm:$0xff pattern:$0x75316420] }
  0xab   : > { %342 = vrot.lane.b32.xlu1 %v337_v10, %s914_s6  ;;  %370 = vst [vmem:[#allocation1] ss:$2 sm:$0xff] %v366_v11 }
  0xad   : > { %340 = vrot.lane.b32.xlu0 %v336_v14, %s914_s6  ;;  %338 = vrot.lane.b32.xlu2 %v335_v15, %s914_s6 }
  0xb0   : > { %v375_v19 = vld.sshfl [vmem:[#allocation1 + $0x10] sm:$0xff pattern:$0x75316420] }
  0xb1   : > { %v378_v21 = vrot.slane %v375_v19, 1  ;;  %415 = vst [vmem:[#allocation1 + $0x10] ss:$2 sm:$0xff] %v410_v16 }
  0xb2   : > { %v374_v22 = vld.sshfl [vmem:[#allocation1 + $0x8] sm:$0xff pattern:$0x75316420]  ;;  %v373_v23 = vld.sshfl [vmem:[#allocation1] sm:$0xff pattern:$0x75316420] }
  0xb3   : > { %383 = vrot.lane.b32.xlu1 %v378_v21, %s915_s7  ;;  %v377_v24 = vrot.slane %v374_v22, 1  ;;  %v376_v25 = vrot.slane %v373_v23, 1  ;;  %413 = vst [vmem:[#allocation1] ss:$2 sm:$0xff] %v409_v20 }
  0xb5   : > { %381 = vrot.lane.b32.xlu0 %v377_v24, %s915_s7  ;;  %379 = vrot.lane.b32.xlu2 %v376_v25, %s915_s7 }
  0xb8   : > { %v418_v28 = vld.sshfl [vmem:[#allocation1 + $0x10] sm:$0xff pattern:$0x75316420] }
  0xb9   : > { %v421_v31 = vrot.slane %v418_v28, 6  ;;  %441 = vst [vmem:[#allocation1 + $0x10] ss:$2 sm:$0xff] %v436_v27 }
  0xba   : > { %v417_v33 = vld.sshfl [vmem:[#allocation1 + $0x8] sm:$0xff pattern:$0x75316420]  ;;  %v416_v34 = vld.sshfl [vmem:[#allocation1] sm:$0xff pattern:$0x75316420] }
  0xbb   : > { %426 = vrot.lane.b32.xlu1 %v421_v31, %s916_s8  ;;  %v420_v35 = vrot.slane %v417_v33, 6  ;;  %v419_v36 = vrot.slane %v416_v34, 6  ;;  %439 = vst [vmem:[#allocation1] ss:$2 sm:$0xff] %v435_v30 }
  0xbd   : > { %424 = vrot.lane.b32.xlu0 %v420_v35, %s916_s8  ;;  %422 = vrot.lane.b32.xlu2 %v419_v36, %s916_s8  ;;  %v502_v36 = vld [vmem:[%s1128_s2 + $0x18] sm:$0xff]  ;;  %s185_s8 = sand.u32 1, %s889_s13  }
  0xc0   : > { %v444_v44 = vld.sshfl [vmem:[#allocation1 + $0x10] sm:$0xff pattern:$0x75316420] }
  0xc1   : > { %v447_v45 = vrot.slane %v444_v44, 3  ;;  %482 = vst [vmem:[#allocation1 + $0x10] ss:$2 sm:$0xff] %v477_v39  ;;  %v503_v39 = vld [vmem:[%s1128_s2 + $0x20] sm:$0xff]  ;;  %v504_v44 = vld [vmem:[%s1128_s2 + $0x28] sm:$0xff] }
  0xc2   : > { %v443_v46 = vld.sshfl [vmem:[#allocation1 + $0x8] sm:$0xff pattern:$0x75316420]  ;;  %v442_v47 = vld.sshfl [vmem:[#allocation1] sm:$0xff pattern:$0x75316420] }
  0xc3   : > { %452 = vrot.lane.b32.xlu1 %v447_v45, %s917_s9  ;;  %v446_v48 = vrot.slane %v443_v46, 3  ;;  %v445_v49 = vrot.slane %v442_v47, 3  ;;  %480 = vst [vmem:[#allocation1] ss:$2 sm:$0xff] %v476_v43  ;;  %v500_v43 = vld [vmem:[%s1128_s2 + $0x8] sm:$0xff]  ;;  %v501_v45 = vld [vmem:[%s1128_s2 + $0x10] sm:$0xff] }
  0xc5   : > { %450 = vrot.lane.b32.xlu0 %v446_v48, %s917_s9  ;;  %448 = vrot.lane.b32.xlu2 %v445_v49, %s917_s9  ;;  %s755_s9 = smul.u32 96, %s185_s8 }
  0xc8   : > { %v485_v50 = vld.sshfl [vmem:[#allocation1 + $0x10] sm:$0xff pattern:$0x75316420] }
  0xca   : > { %v484_v51 = vld.sshfl [vmem:[#allocation1 + $0x8] sm:$0xff pattern:$0x75316420]  ;;  %v483_v52 = vld.sshfl [vmem:[#allocation1] sm:$0xff pattern:$0x75316420] }
  0xcb   : > { %490 = vrot.lane.b32.xlu1 %v485_v50, %s918_s10 }
  0xcd   : > { %488 = vrot.lane.b32.xlu0 %v484_v51, %s918_s10  ;;  %486 = vrot.lane.b32.xlu2 %v483_v52, %s918_s10  ;;  %s187_s10 = scalar_lea.vmem [#allocation3], %s755_s9 }
  0xce   : > { %s636_s23 = sshll.u32 %s187_s10, 4  ;;  %s637_s23 = int_to_ptr.vmem [resolvable:$true] %s636_s23 }
  0xd3   : > { %233 = vrot.lane.b32.xlu1 %v228_v53, %s919_s11 }
  0xd5   : > { %231 = vrot.lane.b32.xlu0 %v227_v54, %s919_s11  ;;  %229 = vrot.lane.b32.xlu2 %v226_v55, %s919_s11  ;;  %s757_s11 = smul.u32 96, %s897_s15  ;;  %s622_s15 = scalar_lea.sflag [#allocation4], %s185_s8 }
  0xd7   : > { %s635_s21 = scalar_lea.hbm %s1129_s3, %s757_s11 }
  0xd8   : > { %s638_s26 = sshll.u32 %s635_s21, 4  ;;  %s639_s26 = int_to_ptr.hbm [resolvable:$true] %s638_s26 }
  0xd9   : > { %s841_s27 = sshra.s32 %s639_s26, 4  ;;  %s842_s27 = int_to_ptr.hbm [resolvable:$true] %s841_s27 }
  0xda   : > { %s843_s28 = scalar_lea.hbm %s842_s27, 96  ;;  %p848_p1 = scmp.lt.s32.totalorder %s842_s27, %s1129_s3 }
  0xdb   : > { %p844_p12 = scmp.ne.s32.totalorder %s842_s27, %s843_s28  ;;  %p849_p2 = scmp.lt.s32.totalorder %s847_s5, %s843_s28 }
  0xdd   : > { %p845_p13 = pnand %p844_p12, %p981_p4  ;;  %p850_p3 = por %p849_p2, %p848_p1 }
  0xdf   : > { %p846_p0 = pneg %p845_p13 }
  0xe1   : > { %p851_p5 = pnand %p850_p3, %p846_p0 }
  0xf7   : > { %v272_v56 = vpop.permute.xlu2 %271 }
  0xff   : > { %v315_v57 = vpop.permute.xlu2 %314 }
 0x107   : > { %v339_v40 = vpop.permute.xlu2 %338 }
 0x10d   : > { %v276_v58 = vpop.permute.xlu1 %275 }
 0x10e   : > { %v274_v59 = vpop.permute.xlu0 %273 }
 0x10f   : > { %v278_v60 = vsel %vm277_vm6, %v272_v56, %v274_v59  ;;  %v279_v61 = vsel %vm277_vm6, %v274_v59, %v276_v58  ;;  %v380_v1 = vpop.permute.xlu2 %379 }
 0x110   : > { %282 = vst [vmem:[#allocation2 + $0x30] sm:$0xc0] %v278_v60 }
 0x111   : > { %283 = vst [vmem:[#allocation2] sm:$0xc0] %v279_v61 }
 0x112   : > { %284 = vst [vmem:[#allocation2 + $0x18] sm:$0x1] %v278_v60 }
 0x113   : > { %285 = vst [vmem:[#allocation2 + $0x10] sm:$0x1] %v279_v61 }
 0x115   : > { %v319_v62 = vpop.permute.xlu1 %318 }
 0x117   : > { %v317_v42 = vpop.permute.xlu0 %316  ;;  %v423_v9 = vpop.permute.xlu2 %422 }
 0x118   : > { %v321_v41 = vsel %vm320_vm7, %v315_v57, %v317_v42  ;;  %v322_v63 = vsel %vm320_vm7, %v317_v42, %v319_v62 }
 0x119   : > { %325 = vst [vmem:[#allocation2 + $0x18] sm:$0xe] %v321_v41 }
 0x11a   : > { %326 = vst [vmem:[#allocation2 + $0x10] sm:$0xe] %v322_v63 }
 0x11d   : > { %v343_v0 = vpop.permute.xlu1 %342 }
 0x11f   : > { %v341_v2 = vpop.permute.xlu0 %340  ;;  %v449_v14 = vpop.permute.xlu2 %448 }
 0x120   : > { %v345_v3 = vsel %vm344_vm8, %v339_v40, %v341_v2  ;;  %v346_v4 = vsel %vm344_vm8, %v341_v2, %v343_v0 }
 0x121   : > { %349 = vst [vmem:[#allocation2 + $0x18] sm:$0x70] %v345_v3 }
 0x122   : > { %350 = vst [vmem:[#allocation2 + $0x10] sm:$0x70] %v346_v4 }
 0x125   : > { %v384_v5 = vpop.permute.xlu1 %383 }
 0x127   : > { %v382_v6 = vpop.permute.xlu0 %381  ;;  %v487_v19 = vpop.permute.xlu2 %486 }
 0x128   : > { %v386_v7 = vsel %vm385_vm9, %v380_v1, %v382_v6  ;;  %v387_v8 = vsel %vm385_vm9, %v382_v6, %v384_v5 }
 0x129   : > { %390 = vst [vmem:[#allocation2 + $0x18] sm:$0x80] %v386_v7 }
 0x12a   : > { %391 = vst [vmem:[#allocation2 + $0x10] sm:$0x80] %v387_v8 }
 0x12b   : > { %392 = vst [vmem:[#allocation2 + $0x8] sm:$0x3] %v386_v7 }
 0x12c   : > { %393 = vst [vmem:[#allocation2 + $0x20] sm:$0x3] %v387_v8 }
 0x12d   : > { %v427_v10 = vpop.permute.xlu1 %426 }
 0x12f   : > { %v425_v11 = vpop.permute.xlu0 %424  ;;  %v230_v25 = vpop.permute.xlu2 %229 }
 0x130   : > { %v429_v12 = vsel %vm428_vm10, %v423_v9, %v425_v11  ;;  %v430_v13 = vsel %vm428_vm10, %v425_v11, %v427_v10  ;;  %v507_v33 = vld [vmem:[#allocation2 + $0x18] sm:$0xff] }
 0x131   : > { %433 = vst [vmem:[#allocation2 + $0x8] sm:$0x1c] %v429_v12  ;;  %v508_v34 = vld [vmem:[#allocation2 + $0x10] sm:$0xff] }
 0x132   : > { %434 = vst [vmem:[#allocation2 + $0x20] sm:$0x1c] %v430_v13 }
 0x135   : > { %v453_v15 = vpop.permute.xlu1 %452 }
 0x137   : > { %v451_v16 = vpop.permute.xlu0 %450 }
 0x138   : > { %v455_v17 = vsel %vm454_vm11, %v449_v14, %v451_v16  ;;  %v456_v18 = vsel %vm454_vm11, %v451_v16, %v453_v15 }
 0x139   : > { %459 = vst [vmem:[#allocation2 + $0x8] sm:$0xe0] %v455_v17 }
 0x13a   : > { %460 = vst [vmem:[#allocation2 + $0x20] sm:$0xe0] %v456_v18 }
 0x13d   : > { %v491_v20 = vpop.permute.xlu1 %490 }
 0x13f   : > { %v489_v21 = vpop.permute.xlu0 %488 }
 0x140   : > { %v493_v22 = vsel %vm492_vm12, %v487_v19, %v489_v21  ;;  %v494_v23 = vsel %vm492_vm12, %v489_v21, %v491_v20  ;;  %v509_v31 = vld [vmem:[#allocation2 + $0x8] sm:$0xff] }
 0x141   : > { %497 = vst [vmem:[#allocation2 + $0x28] sm:$0x7] %v493_v22  ;;  %v510_v32 = vld [vmem:[#allocation2 + $0x20] sm:$0xff] }
 0x142   : > { %498 = vst [vmem:[#allocation2 + $0x38] sm:$0x7] %v494_v23 }
 0x145   : > { %v234_v24 = vpop.permute.xlu1 %233 }
 0x147   : > { %v232_v26 = vpop.permute.xlu0 %231 }
 0x148   : > { %v237_v27 = vsel %vm235_vm13, %v232_v26, %v234_v24  ;;  %v236_v28 = vsel %vm235_vm13, %v230_v25, %v232_v26  ;;  %v511_v29 = vld [vmem:[#allocation2 + $0x28] sm:$0x7] }
 0x149   : > { %241 = vst [vmem:[#allocation2] sm:$0x38] %v237_v27  ;;  %730 = vmatpush.msk.msra.mxu0 %vm532_vm14, %v511_v29  ;;  %747 = vmatpush.msk.msra.mxu2 %vm532_vm14, %v511_v29  ;;  %v512_v30 = vld [vmem:[#allocation2 + $0x38] sm:$0x7] }
 0x14a   : > { %240 = vst [vmem:[#allocation2 + $0x30] sm:$0x38] %v236_v28  ;;  %737 = vmatpush.msk.msra.mxu1 %vm532_vm14, %v512_v30  ;;  %751 = vmatpush.msk.msra.mxu3 %vm532_vm14, %v512_v30 }
 0x14b   : > { %552 = vmatpush.msra.mxu0 %v509_v31  ;;  %748 = vmatpush.msra.mxu2 %v509_v31 }
 0x14c   : > { %587 = vmatpush.msra.mxu1 %v510_v32  ;;  %752 = vmatpush.msra.mxu3 %v510_v32 }
 0x14d   : > { %553 = vmatpush.msra.mxu0 %v507_v33  ;;  %749 = vmatpush.msra.mxu2 %v507_v33 }
 0x14e   : > { %588 = vmatpush.msra.mxu1 %v508_v34  ;;  %753 = vmatpush.msra.mxu3 %v508_v34 }
 0x150   : > { %v506_v35 = vld [vmem:[#allocation2] sm:$0xff] }
 0x151   : > { %v505_v37 = vld [vmem:[#allocation2 + $0x30] sm:$0xff]  ;;  %589 = vmatpush.msra.mxu1 %v506_v35  ;;  %754 = vmatpush.msra.mxu3 %v506_v35 }
 0x152   : > { %554 = vmatpush.msra.mxu0 %v505_v37  ;;  %750 = vmatpush.msra.mxu2 %v505_v37 }
 0x153   : > { %734 = vmatmul.msk.f32.vlgmr.msra.gmra.mxu2 %vm513_vm15, %v502_v36  ;;  %741 = vmatmul.msk.f32.vlgmr.msra.gmra.mxu3 %vm513_vm15, %v502_v36 }
 0x154   : > { %731 = vmatmul.msk.f32.vlgmr.msra.gmra.mxu0 %vm513_vm15, %v499_v38  ;;  %738 = vmatmul.msk.f32.vlgmr.msra.gmra.mxu1 %vm513_vm15, %v499_v38 }
 0x15b   : > { %735 = vmatmul.msk.f32.gmra.mxu2 %vm513_vm15, %v503_v39  ;;  %742 = vmatmul.msk.f32.gmra.mxu3 %vm513_vm15, %v503_v39 }
 0x15c   : > { %732 = vmatmul.msk.f32.gmra.mxu0 %vm513_vm15, %v500_v43  ;;  %739 = vmatmul.msk.f32.gmra.mxu1 %vm513_vm15, %v500_v43 }
 0x163   : > { %736 = vmatmul.msk.f32.gmra.mxu2 %vm513_vm15, %v504_v44  ;;  %743 = vmatmul.msk.f32.gmra.mxu3 %vm513_vm15, %v504_v44 }
 0x164   : > { %733 = vmatmul.msk.f32.gmra.mxu0 %vm513_vm15, %v501_v45  ;;  %740 = vmatmul.msk.f32.gmra.mxu1 %vm513_vm15, %v501_v45 }
 0x1d1   : > { %v556_v46 = vpop.f32.mrf.mxu0  ;;  %v591_v47 = vpop.f32.mrf.mxu1 }
 0x1d2   : > { %609 = vst [vmem:[%s187_s10] sm:$0xff] %v556_v46 }
 0x1d3   : > { %610 = vst [vmem:[%s187_s10 + $0x8] sm:$0xff] %v591_v47 }
 0x1d6   : > { %v565_v48 = vpop.f32.mrf.mxu2  ;;  %v600_v49 = vpop.f32.mrf.mxu3 }
 0x1d7   : > { %615 = vst [vmem:[%s187_s10 + $0x30] sm:$0xff] %v565_v48 }
 0x1d8   : > { %616 = vst [vmem:[%s187_s10 + $0x38] sm:$0xff] %v600_v49 }
 0x1d9   : > { %v559_v50 = vpop.f32.mrf.mxu0  ;;  %v594_v51 = vpop.f32.mrf.mxu1 }
 0x1da   : > { %611 = vst [vmem:[%s187_s10 + $0x10] sm:$0xff] %v559_v50 }
 0x1db   : > { %612 = vst [vmem:[%s187_s10 + $0x18] sm:$0xff] %v594_v51 }
 0x1de   : > { %v568_v52 = vpop.f32.mrf.mxu2  ;;  %v603_v53 = vpop.f32.mrf.mxu3 }
 0x1df   : > { %617 = vst [vmem:[%s187_s10 + $0x40] sm:$0xff] %v568_v52 }
 0x1e0   : > { %618 = vst [vmem:[%s187_s10 + $0x48] sm:$0xff] %v603_v53 }
 0x1e1   : > { %v562_v54 = vpop.f32.mrf.mxu0  ;;  %v597_v55 = vpop.f32.mrf.mxu1 }
 0x1e2   : > { %613 = vst [vmem:[%s187_s10 + $0x20] sm:$0xff] %v562_v54 }
 0x1e3   : > { %614 = vst [vmem:[%s187_s10 + $0x28] sm:$0xff] %v597_v55 }
 0x1e6   : > { %v571_v56 = vpop.f32.mrf.mxu2  ;;  %v606_v57 = vpop.f32.mrf.mxu3 }
 0x1e7   : > { %619 = vst [vmem:[%s187_s10 + $0x50] sm:$0xff] %v571_v56 }
 0x1e8   : > { %620 = vst [vmem:[%s187_s10 + $0x58] sm:$0xff] %v606_v57 }
 0x1e9   : > { %854 = shalt.err (!%p851_p5)
}
 0x1ea   : > { %s920_s8 = smov 256  }
 0x1eb   : > { %758 = dma.vmem_to_hbm [thread:$0]  (%p981_p4), %s637_s23, 1536, %s639_s26, %s622_s15, %s920_s8, %s920_s8, %s910_s29  }
 0x1ec PF: > { %p764_p6 = scmp.ge.s32.totalorder %s905_s17, 2  ;;  %s653_s9 = sand.u32 1, %s885_s12  }
 0x1ed   : > { %s654_s10 = scalar_lea.sflag [#allocation4], %s653_s9 }
 0x1ee   : > { %p761_p7 = pnand %p764_p6, %p988_p8 }
 0x1f0   : > { %p762_p9 = pneg %p761_p7 }
 0x1f2   : > { %880 = dma.done.wait (%p762_p9), %s654_s10, 1536  }
 0x1f3   : > { %882 = vsyncadd (%p762_p9), %s654_s10, 4294965760  ;;  %s16_s17 = sadd.s32 1, %s905_s17   ;;  %s1132_s12 = smov %s889_s13 }
 0x1f4   : > { %p13_p10 = scmp.ge.s32.totalorder %s16_s17, 4   ;;  %s1133_s13 = smov %s893_s14 }
 0x1f5   : > { %s1134_s14 = smov %s994_s25  ;;  %s1135_s15 = smov %s901_s16 }
 0x1f6   : > { %s1136_s16 = smov %s1138_s20  ;;  %15 = sbr.rel (!%p13_p10) target bundleno = 4 (0x4), region = 77 }
 0x1fb   :  { %660 = vsyncpa [#allocation4], 1 }
 0x1fc   :  { %662 = vsyncpa [#allocation4 + $0x1], 1 }

</bundles_post_ra>
